<compile_context>
chip_gen: v7x
topology: tpu7x:2x2x1
jax: 0.10.0
libtpu: 0.0.40
codegen_flags: <defaults>
</compile_context>

<pallas_src>
import functools

import jax
import jax.numpy as jnp
from jax import lax
from jax.experimental import pallas as pl
from jax.experimental.pallas import tpu as pltpu

_EPS = 1e-5  # PyTorch GroupNorm default eps


def _erf(x):
    # Abramowitz & Stegun 7.1.26 rational approximation, |err| <= 1.5e-7.
    a1, a2, a3, a4, a5 = 0.254829592, -0.284496736, 1.421413741, -1.453152027, 1.061405429
    p = 0.3275911
    ax = jnp.abs(x)
    t = 1.0 / (1.0 + p * ax)
    poly = t * (a1 + t * (a2 + t * (a3 + t * (a4 + t * a5))))
    y = 1.0 - poly * jnp.exp(-ax * ax)
    return jnp.where(x >= 0, y, -y)


def _gelu(x):
    # Exact (erf-based) GELU, matching torch.nn.GELU() to ~1e-7.
    return 0.5 * x * (1.0 + _erf(x * 0.7071067811865476))


# ---------------------------------------------------------------------------
# Fused kernel: one batch sample per grid step, (C, H*W) lane-dense layout.
#   aux rows: [0]=left-mask [1]=right-mask [2]=up-mask [3]=down-mask
#             [4]=1/valid-count (count_include_pad=False)
# ---------------------------------------------------------------------------
def _fm_kernel(W, x_ref, aux_ref, g1_ref, bb1_ref, g2_ref, bb2_ref,
               w1_ref, b1_ref, w2_ref, b2_ref, o_ref):
    x = x_ref[...].astype(jnp.float32)                     # (C, HW)
    C, HW = x.shape
    inv_n = 1.0 / (C * HW)

    lmask = aux_ref[0:1, :]                                # (1, HW) f32
    rmask = aux_ref[1:2, :]
    umask = aux_ref[2:3, :]
    dmask = aux_ref[3:4, :]
    inv_cnt = aux_ref[4:5, :]

    # ---- GroupNorm1 (1 group => stats over the whole sample) --------------
    mean = jnp.sum(x, keepdims=True) * inv_n               # (1, 1)
    xc = x - mean
    var = jnp.sum(xc * xc, keepdims=True) * inv_n
    z = (xc * lax.rsqrt(var + _EPS) * g1_ref[...].astype(jnp.float32)
         + bb1_ref[...].astype(jnp.float32))               # (C, HW)

    # ---- 3x3 average pool (stride 1, pad 1, count_include_pad=False) ------
    # Separable: 1x3 along the image row (flat index +-1, masked at row
    # boundaries), then 3x1 across rows (flat index +-W, masked top/bottom).
    # pltpu.roll == jnp.roll semantics: roll(z, s)[k] = z[k-s] (circular);
    # the wrap-around terms are killed by the masks.
    rowsum = (z
              + pltpu.roll(z, 1, 1) * lmask                # left neighbor
              + pltpu.roll(z, HW - 1, 1) * rmask)          # right neighbor
    colsum = (rowsum
              + pltpu.roll(rowsum, W, 1) * umask           # row above
              + pltpu.roll(rowsum, HW - W, 1) * dmask)     # row below
    pool = colsum * inv_cnt

    y1 = x + (pool - z)                                    # token-mixer residual

    # ---- GroupNorm2 --------------------------------------------------------
    mean2 = jnp.sum(y1, keepdims=True) * inv_n
    yc = y1 - mean2
    var2 = jnp.sum(yc * yc, keepdims=True) * inv_n
    z2 = (yc * lax.rsqrt(var2 + _EPS) * g2_ref[...].astype(jnp.float32)
          + bb2_ref[...].astype(jnp.float32))              # (C, HW)

    # ---- channel MLP: Conv1x1 -> GELU -> Conv1x1 (MXU matmuls) -------------
    # Operands stay in the model dtype (bf16 fast path when applicable);
    # accumulation is f32 via preferred_element_type.
    h = jnp.dot(w1_ref[...], z2.astype(w1_ref.dtype),
                preferred_element_type=jnp.float32)        # (Hd, HW)
    h = _gelu(h + b1_ref[...].astype(jnp.float32))
    o = jnp.dot(w2_ref[...], h.astype(w2_ref.dtype),
                preferred_element_type=jnp.float32)        # (C, HW)
    o = o + b2_ref[...].astype(jnp.float32)

    o_ref[...] = (y1 + o).astype(o_ref.dtype)


# ---------------------------------------------------------------------------
# Wrapper
# ---------------------------------------------------------------------------
@jax.jit
def fm_forward(x, gn1_w, gn1_b, gn2_w, gn2_b, fc1_w, fc1_b, fc2_w, fc2_b):
    B, C, H, W = x.shape
    Hd = fc1_w.shape[0]
    HW = H * W

    # Lane-dense flattened view of the input (row-major reshape, no copy).
    xf = x.reshape(B, C, HW)

    # Precomputed (constant-folded under jit) boundary masks & reciprocal
    # valid-cell counts for count_include_pad=False.
    ii = jnp.arange(HW, dtype=jnp.int32) // W
    jj = jnp.arange(HW, dtype=jnp.int32) % W
    lmask = (jj != 0).astype(jnp.float32)
    rmask = (jj != W - 1).astype(jnp.float32)
    umask = (ii != 0).astype(jnp.float32)
    dmask = (ii != H - 1).astype(jnp.float32)
    rcount = 3.0 - (ii == 0).astype(jnp.float32) - (ii == H - 1).astype(jnp.float32)
    ccount = 3.0 - (jj == 0).astype(jnp.float32) - (jj == W - 1).astype(jnp.float32)
    inv_cnt = 1.0 / (rcount * ccount)
    aux = jnp.stack([lmask, rmask, umask, dmask, inv_cnt], axis=0)   # (5, HW)

    itemsize = jnp.dtype(x.dtype).itemsize
    cost = pl.CostEstimate(
        flops=int(B * (4 * Hd * C * HW + 40 * C * HW)),
        transcendentals=int(B * Hd * HW),
        bytes_accessed=int(2 * B * C * HW * itemsize
                           + (2 * Hd * C + Hd + 5 * C + HW * 5) * 4),
    )

    # TODO(synk): for B==1 on v7x, add a second parallel axis over H*W tiles
    # (GN stats via a cheap pre-pass) so both TensorCores are used.
    out = pl.pallas_call(
        functools.partial(_fm_kernel, W),
        out_shape=jax.ShapeDtypeStruct((B, C, HW), x.dtype),
        grid_spec=pltpu.PrefetchScalarGridSpec(
            num_scalar_prefetch=0,
            grid=(B,),
            in_specs=[
                pl.BlockSpec((None, C, HW), lambda b: (b, 0, 0)),   # x sample
                pl.BlockSpec((5, HW), lambda b: (0, 0)),            # masks/counts
                pl.BlockSpec((C, 1), lambda b: (0, 0)),             # gn1 weight
                pl.BlockSpec((C, 1), lambda b: (0, 0)),             # gn1 bias
                pl.BlockSpec((C, 1), lambda b: (0, 0)),             # gn2 weight
                pl.BlockSpec((C, 1), lambda b: (0, 0)),             # gn2 bias
                pl.BlockSpec((Hd, C), lambda b: (0, 0)),            # fc1 weight
                pl.BlockSpec((Hd, 1), lambda b: (0, 0)),            # fc1 bias
                pl.BlockSpec((C, Hd), lambda b: (0, 0)),            # fc2 weight
                pl.BlockSpec((C, 1), lambda b: (0, 0)),             # fc2 bias
            ],
            out_specs=pl.BlockSpec((None, C, HW), lambda b: (b, 0, 0)),
        ),
        compiler_params=pltpu.CompilerParams(dimension_semantics=("parallel",)),
        cost_estimate=cost,
    )(xf, aux,
      gn1_w.reshape(C, 1), gn1_b.reshape(C, 1),
      gn2_w.reshape(C, 1), gn2_b.reshape(C, 1),
      fc1_w, fc1_b.reshape(Hd, 1), fc2_w, fc2_b.reshape(C, 1))

    return out.reshape(B, C, H, W)


# ---------------------------------------------------------------------------
# Pure-JAX reference (mirrors the PyTorch FM forward)
# ---------------------------------------------------------------------------
def fm_ref(x, gn1_w, gn1_b, gn2_w, gn2_b, fc1_w, fc1_b, fc2_w, fc2_b, pool_size=3):
    hp = lax.Precision.HIGHEST

    def gnorm(v, w, b):
        mean = jnp.mean(v, axis=(1, 2, 3), keepdims=True)
        var = jnp.mean((v - mean) ** 2, axis=(1, 2, 3), keepdims=True)
        vn = (v - mean) / jnp.sqrt(var + _EPS)
        return vn * w[None, :, None, None] + b[None, :, None, None]

    def avg_pool(v):
        pad = pool_size // 2
        cfg = ((0, 0), (0, 0), (pad, pad), (pad, pad))
        win, strides = (1, 1, pool_size, pool_size), (1, 1, 1, 1)
        s = lax.reduce_window(jnp.pad(v, cfg), 0.0, lax.add, win, strides, "VALID")
        c = lax.reduce_window(jnp.pad(jnp.ones_like(v), cfg), 0.0, lax.add, win, strides, "VALID")
        return s / c  # count_include_pad=False

    z1 = gnorm(x, gn1_w, gn1_b)
    y1 = x + (avg_pool(z1) - z1)
    z2 = gnorm(y1, gn2_w, gn2_b)
    h = jnp.einsum("kc,bchw->bkhw", fc1_w, z2, precision=hp) + fc1_b[None, :, None, None]
    h = 0.5 * h * (1.0 + jax.scipy.special.erf(h * 0.7071067811865476))  # exact GELU
    o = jnp.einsum("ck,bkhw->bchw", fc2_w, h, precision=hp) + fc2_b[None, :, None, None]
    return y1 + o


if __name__ == "__main__":
    key = jax.random.PRNGKey(0)
    B, C, H, W = 2, 4, 16, 16          # small NCHW input (HW = 256, lane-dense)
    mlp_ratio = 4.0
    Hd = int(C * mlp_ratio)

    ks = jax.random.split(key, 9)
    x = jax.random.normal(ks[0], (B, C, H, W), dtype=jnp.float32)
    gn1_w = 1.0 + 0.1 * jax.random.normal(ks[1], (C,), dtype=jnp.float32)
    gn1_b = 0.1 * jax.random.normal(ks[2], (C,), dtype=jnp.float32)
    gn2_w = 1.0 + 0.1 * jax.random.normal(ks[3], (C,), dtype=jnp.float32)
    gn2_b = 0.1 * jax.random.normal(ks[4], (C,), dtype=jnp.float32)
    fc1_w = 0.02 * jax.random.normal(ks[5], (Hd, C), dtype=jnp.float32)   # Conv2d(C,Hd,1)
    fc1_b = 0.02 * jax.random.normal(ks[6], (Hd,), dtype=jnp.float32)
    fc2_w = 0.02 * jax.random.normal(ks[7], (C, Hd), dtype=jnp.float32)   # Conv2d(Hd,C,1)
    fc2_b = 0.02 * jax.random.normal(ks[8], (C,), dtype=jnp.float32)

    y = fm_forward(x, gn1_w, gn1_b, gn2_w, gn2_b, fc1_w, fc1_b, fc2_w, fc2_b)
    y = jax.block_until_ready(y)

    y_ref = fm_ref(x, gn1_w, gn1_b, gn2_w, gn2_b, fc1_w, fc1_b, fc2_w, fc2_b)

    assert y.shape == x.shape and y.dtype == x.dtype
    max_err = float(jnp.max(jnp.abs(y - y_ref)))
    assert jnp.allclose(y, y_ref, atol=1e-4, rtol=1e-4), f"mismatch vs reference, max abs err={max_err}"

    print("KERNEL_OK")
</pallas_src>

<mosaic_0001>
module attributes {stable_mosaic.version = 11 : i64} {
  func.func @_fm_kernel(%arg0: i32, %arg1: memref<1x4x256xf32, #tpu.memory_space<vmem>>, %arg2: memref<5x256xf32, #tpu.memory_space<vmem>>, %arg3: memref<4x1xf32, #tpu.memory_space<vmem>>, %arg4: memref<4x1xf32, #tpu.memory_space<vmem>>, %arg5: memref<4x1xf32, #tpu.memory_space<vmem>>, %arg6: memref<4x1xf32, #tpu.memory_space<vmem>>, %arg7: memref<16x4xf32, #tpu.memory_space<vmem>>, %arg8: memref<16x1xf32, #tpu.memory_space<vmem>>, %arg9: memref<4x16xf32, #tpu.memory_space<vmem>>, %arg10: memref<4x1xf32, #tpu.memory_space<vmem>>, %arg11: memref<1x4x256xf32, #tpu.memory_space<vmem>>) attributes {dimension_semantics = [#tpu.dimension_semantics<parallel>], iteration_bounds = array<i64: 2>, scalar_prefetch = 0 : i64, scratch_operands = 0 : i64, tpu.core_type = #tpu.core_type<tc>, window_params = [{transform_indices = @transform_0, window_bounds = array<i64: 1, 4, 256>}, {pipeline_mode = #tpu.pipeline_mode<synchronous>, transform_indices = @transform_1, window_bounds = array<i64: 5, 256>}, {pipeline_mode = #tpu.pipeline_mode<synchronous>, transform_indices = @transform_2, window_bounds = array<i64: 4, 1>}, {pipeline_mode = #tpu.pipeline_mode<synchronous>, transform_indices = @transform_3, window_bounds = array<i64: 4, 1>}, {pipeline_mode = #tpu.pipeline_mode<synchronous>, transform_indices = @transform_4, window_bounds = array<i64: 4, 1>}, {pipeline_mode = #tpu.pipeline_mode<synchronous>, transform_indices = @transform_5, window_bounds = array<i64: 4, 1>}, {pipeline_mode = #tpu.pipeline_mode<synchronous>, transform_indices = @transform_6, window_bounds = array<i64: 16, 4>}, {pipeline_mode = #tpu.pipeline_mode<synchronous>, transform_indices = @transform_7, window_bounds = array<i64: 16, 1>}, {pipeline_mode = #tpu.pipeline_mode<synchronous>, transform_indices = @transform_8, window_bounds = array<i64: 4, 16>}, {pipeline_mode = #tpu.pipeline_mode<synchronous>, transform_indices = @transform_9, window_bounds = array<i64: 4, 1>}, {transform_indices = @transform_10, window_bounds = array<i64: 1, 4, 256>}]} {
    %c0 = arith.constant 0 : index
    %c0_0 = arith.constant 0 : index
    %c0_1 = arith.constant 0 : index
    %0 = vector.load %arg1[%c0, %c0_0, %c0_1] : memref<1x4x256xf32, #tpu.memory_space<vmem>>, vector<1x4x256xf32>
    %1 = vector.shape_cast %0 : vector<1x4x256xf32> to vector<4x256xf32>
    %c0_2 = arith.constant 0 : index
    %c0_3 = arith.constant 0 : index
    %2 = vector.load %arg2[%c0_2, %c0_3] : memref<5x256xf32, #tpu.memory_space<vmem>>, vector<1x256xf32>
    %c1 = arith.constant 1 : index
    %c0_4 = arith.constant 0 : index
    %3 = vector.load %arg2[%c1, %c0_4] : memref<5x256xf32, #tpu.memory_space<vmem>>, vector<1x256xf32>
    %c2 = arith.constant 2 : index
    %c0_5 = arith.constant 0 : index
    %4 = vector.load %arg2[%c2, %c0_5] : memref<5x256xf32, #tpu.memory_space<vmem>>, vector<1x256xf32>
    %c3 = arith.constant 3 : index
    %c0_6 = arith.constant 0 : index
    %5 = vector.load %arg2[%c3, %c0_6] : memref<5x256xf32, #tpu.memory_space<vmem>>, vector<1x256xf32>
    %c4 = arith.constant 4 : index
    %c0_7 = arith.constant 0 : index
    %6 = vector.load %arg2[%c4, %c0_7] : memref<5x256xf32, #tpu.memory_space<vmem>>, vector<1x256xf32>
    %7 = vector.shape_cast %1 : vector<4x256xf32> to vector<1x4x256xf32>
    %cst = arith.constant dense<0.000000e+00> : vector<1xf32>
    %8 = vector.multi_reduction <add>, %7, %cst [1, 2] : vector<1x4x256xf32> to vector<1xf32>
    %9 = vector.shape_cast %8 : vector<1xf32> to vector<1x1x1xf32>
    %10 = vector.extract %9[0, 0, 0] : f32 from vector<1x1x1xf32>
    %11 = vector.broadcast %10 : f32 to vector<1x1xf32>
    %cst_8 = arith.constant 9.765625E-4 : f32
    %12 = vector.broadcast %cst_8 : f32 to vector<1x1xf32>
    %13 = arith.mulf %11, %12 : vector<1x1xf32>
    %14 = vector.broadcast %13 : vector<1x1xf32> to vector<4x256xf32>
    %15 = arith.subf %1, %14 : vector<4x256xf32>
    %16 = arith.mulf %15, %15 : vector<4x256xf32>
    %17 = vector.shape_cast %16 : vector<4x256xf32> to vector<1x4x256xf32>
    %cst_9 = arith.constant dense<0.000000e+00> : vector<1xf32>
    %18 = vector.multi_reduction <add>, %17, %cst_9 [1, 2] : vector<1x4x256xf32> to vector<1xf32>
    %19 = vector.shape_cast %18 : vector<1xf32> to vector<1x1x1xf32>
    %20 = vector.extract %19[0, 0, 0] : f32 from vector<1x1x1xf32>
    %21 = vector.broadcast %20 : f32 to vector<1x1xf32>
    %cst_10 = arith.constant 9.765625E-4 : f32
    %22 = vector.broadcast %cst_10 : f32 to vector<1x1xf32>
    %23 = arith.mulf %21, %22 : vector<1x1xf32>
    %cst_11 = arith.constant 9.99999974E-6 : f32
    %24 = vector.broadcast %cst_11 : f32 to vector<1x1xf32>
    %25 = arith.addf %23, %24 : vector<1x1xf32>
    %26 = math.rsqrt %25 : vector<1x1xf32>
    %27 = vector.broadcast %26 : vector<1x1xf32> to vector<4x256xf32>
    %28 = arith.mulf %15, %27 : vector<4x256xf32>
    %c0_12 = arith.constant 0 : index
    %c0_13 = arith.constant 0 : index
    %29 = vector.load %arg3[%c0_12, %c0_13] : memref<4x1xf32, #tpu.memory_space<vmem>>, vector<4x1xf32>
    %30 = vector.broadcast %29 : vector<4x1xf32> to vector<4x256xf32>
    %31 = arith.mulf %28, %30 : vector<4x256xf32>
    %c0_14 = arith.constant 0 : index
    %c0_15 = arith.constant 0 : index
    %32 = vector.load %arg4[%c0_14, %c0_15] : memref<4x1xf32, #tpu.memory_space<vmem>>, vector<4x1xf32>
    %33 = vector.broadcast %32 : vector<4x1xf32> to vector<4x256xf32>
    %34 = arith.addf %31, %33 : vector<4x256xf32>
    %c1_i32 = arith.constant 1 : i32
    %35 = tpu.dynamic_rotate %34 by %c1_i32 dim 1 : vector<4x256xf32>, i32 -> vector<4x256xf32>
    %36 = vector.broadcast %2 : vector<1x256xf32> to vector<4x256xf32>
    %37 = arith.mulf %35, %36 : vector<4x256xf32>
    %38 = arith.addf %34, %37 : vector<4x256xf32>
    %c255_i32 = arith.constant 255 : i32
    %39 = tpu.dynamic_rotate %34 by %c255_i32 dim 1 : vector<4x256xf32>, i32 -> vector<4x256xf32>
    %40 = vector.broadcast %3 : vector<1x256xf32> to vector<4x256xf32>
    %41 = arith.mulf %39, %40 : vector<4x256xf32>
    %42 = arith.addf %38, %41 : vector<4x256xf32>
    %c16_i32 = arith.constant 16 : i32
    %43 = tpu.dynamic_rotate %42 by %c16_i32 dim 1 : vector<4x256xf32>, i32 -> vector<4x256xf32>
    %44 = vector.broadcast %4 : vector<1x256xf32> to vector<4x256xf32>
    %45 = arith.mulf %43, %44 : vector<4x256xf32>
    %46 = arith.addf %42, %45 : vector<4x256xf32>
    %c240_i32 = arith.constant 240 : i32
    %47 = tpu.dynamic_rotate %42 by %c240_i32 dim 1 : vector<4x256xf32>, i32 -> vector<4x256xf32>
    %48 = vector.broadcast %5 : vector<1x256xf32> to vector<4x256xf32>
    %49 = arith.mulf %47, %48 : vector<4x256xf32>
    %50 = arith.addf %46, %49 : vector<4x256xf32>
    %51 = vector.broadcast %6 : vector<1x256xf32> to vector<4x256xf32>
    %52 = arith.mulf %50, %51 : vector<4x256xf32>
    %53 = arith.subf %52, %34 : vector<4x256xf32>
    %54 = arith.addf %1, %53 : vector<4x256xf32>
    %55 = vector.shape_cast %54 : vector<4x256xf32> to vector<1x4x256xf32>
    %cst_16 = arith.constant dense<0.000000e+00> : vector<1xf32>
    %56 = vector.multi_reduction <add>, %55, %cst_16 [1, 2] : vector<1x4x256xf32> to vector<1xf32>
    %57 = vector.shape_cast %56 : vector<1xf32> to vector<1x1x1xf32>
    %58 = vector.extract %57[0, 0, 0] : f32 from vector<1x1x1xf32>
    %59 = vector.broadcast %58 : f32 to vector<1x1xf32>
    %cst_17 = arith.constant 9.765625E-4 : f32
    %60 = vector.broadcast %cst_17 : f32 to vector<1x1xf32>
    %61 = arith.mulf %59, %60 : vector<1x1xf32>
    %62 = vector.broadcast %61 : vector<1x1xf32> to vector<4x256xf32>
    %63 = arith.subf %54, %62 : vector<4x256xf32>
    %64 = arith.mulf %63, %63 : vector<4x256xf32>
    %65 = vector.shape_cast %64 : vector<4x256xf32> to vector<1x4x256xf32>
    %cst_18 = arith.constant dense<0.000000e+00> : vector<1xf32>
    %66 = vector.multi_reduction <add>, %65, %cst_18 [1, 2] : vector<1x4x256xf32> to vector<1xf32>
    %67 = vector.shape_cast %66 : vector<1xf32> to vector<1x1x1xf32>
    %68 = vector.extract %67[0, 0, 0] : f32 from vector<1x1x1xf32>
    %69 = vector.broadcast %68 : f32 to vector<1x1xf32>
    %cst_19 = arith.constant 9.765625E-4 : f32
    %70 = vector.broadcast %cst_19 : f32 to vector<1x1xf32>
    %71 = arith.mulf %69, %70 : vector<1x1xf32>
    %cst_20 = arith.constant 9.99999974E-6 : f32
    %72 = vector.broadcast %cst_20 : f32 to vector<1x1xf32>
    %73 = arith.addf %71, %72 : vector<1x1xf32>
    %74 = math.rsqrt %73 : vector<1x1xf32>
    %75 = vector.broadcast %74 : vector<1x1xf32> to vector<4x256xf32>
    %76 = arith.mulf %63, %75 : vector<4x256xf32>
    %c0_21 = arith.constant 0 : index
    %c0_22 = arith.constant 0 : index
    %77 = vector.load %arg5[%c0_21, %c0_22] : memref<4x1xf32, #tpu.memory_space<vmem>>, vector<4x1xf32>
    %78 = vector.broadcast %77 : vector<4x1xf32> to vector<4x256xf32>
    %79 = arith.mulf %76, %78 : vector<4x256xf32>
    %c0_23 = arith.constant 0 : index
    %c0_24 = arith.constant 0 : index
    %80 = vector.load %arg6[%c0_23, %c0_24] : memref<4x1xf32, #tpu.memory_space<vmem>>, vector<4x1xf32>
    %81 = vector.broadcast %80 : vector<4x1xf32> to vector<4x256xf32>
    %82 = arith.addf %79, %81 : vector<4x256xf32>
    %c0_25 = arith.constant 0 : index
    %c0_26 = arith.constant 0 : index
    %83 = vector.load %arg7[%c0_25, %c0_26] : memref<16x4xf32, #tpu.memory_space<vmem>>, vector<16x4xf32>
    %cst_27 = arith.constant dense<0.000000e+00> : vector<16x256xf32>
    %84 = tpu.matmul %83, %82, %cst_27 {dimension_numbers = #tpu.dot_dimension_numbers<[1], [0], [0], [1], [0, 0, 1, 1], [], []>} : vector<16x4xf32>, vector<4x256xf32>, vector<16x256xf32> -> vector<16x256xf32>
    %c0_28 = arith.constant 0 : index
    %c0_29 = arith.constant 0 : index
    %85 = vector.load %arg8[%c0_28, %c0_29] : memref<16x1xf32, #tpu.memory_space<vmem>>, vector<16x1xf32>
    %86 = vector.broadcast %85 : vector<16x1xf32> to vector<16x256xf32>
    %87 = arith.addf %84, %86 : vector<16x256xf32>
    %cst_30 = arith.constant 5.000000e-01 : f32
    %88 = vector.broadcast %cst_30 : f32 to vector<16x256xf32>
    %89 = arith.mulf %88, %87 : vector<16x256xf32>
    %cst_31 = arith.constant 0.707106769 : f32
    %90 = vector.broadcast %cst_31 : f32 to vector<16x256xf32>
    %91 = arith.mulf %87, %90 : vector<16x256xf32>
    %92 = math.absf %91 : vector<16x256xf32>
    %cst_32 = arith.constant 0.327591091 : f32
    %93 = vector.broadcast %cst_32 : f32 to vector<16x256xf32>
    %94 = arith.mulf %93, %92 : vector<16x256xf32>
    %cst_33 = arith.constant 1.000000e+00 : f32
    %95 = vector.broadcast %cst_33 : f32 to vector<16x256xf32>
    %96 = arith.addf %95, %94 : vector<16x256xf32>
    %cst_34 = arith.constant 1.000000e+00 : f32
    %97 = vector.broadcast %cst_34 : f32 to vector<16x256xf32>
    %98 = arith.divf %97, %96 : vector<16x256xf32>
    %cst_35 = arith.constant 1.06140542 : f32
    %99 = vector.broadcast %cst_35 : f32 to vector<16x256xf32>
    %100 = arith.mulf %98, %99 : vector<16x256xf32>
    %cst_36 = arith.constant -1.45315206 : f32
    %101 = vector.broadcast %cst_36 : f32 to vector<16x256xf32>
    %102 = arith.addf %101, %100 : vector<16x256xf32>
    %103 = arith.mulf %98, %102 : vector<16x256xf32>
    %cst_37 = arith.constant 1.42141378 : f32
    %104 = vector.broadcast %cst_37 : f32 to vector<16x256xf32>
    %105 = arith.addf %104, %103 : vector<16x256xf32>
    %106 = arith.mulf %98, %105 : vector<16x256xf32>
    %cst_38 = arith.constant -0.284496725 : f32
    %107 = vector.broadcast %cst_38 : f32 to vector<16x256xf32>
    %108 = arith.addf %107, %106 : vector<16x256xf32>
    %109 = arith.mulf %98, %108 : vector<16x256xf32>
    %cst_39 = arith.constant 0.254829586 : f32
    %110 = vector.broadcast %cst_39 : f32 to vector<16x256xf32>
    %111 = arith.addf %110, %109 : vector<16x256xf32>
    %112 = arith.mulf %98, %111 : vector<16x256xf32>
    %cst_40 = arith.constant 0.000000e+00 : f32
    %113 = vector.broadcast %cst_40 : f32 to vector<16x256xf32>
    %114 = arith.subf %113, %92 : vector<16x256xf32>
    %115 = arith.mulf %114, %92 : vector<16x256xf32>
    %116 = math.exp %115 : vector<16x256xf32>
    %117 = arith.mulf %112, %116 : vector<16x256xf32>
    %cst_41 = arith.constant 1.000000e+00 : f32
    %118 = vector.broadcast %cst_41 : f32 to vector<16x256xf32>
    %119 = arith.subf %118, %117 : vector<16x256xf32>
    %cst_42 = arith.constant 0.000000e+00 : f32
    %120 = vector.broadcast %cst_42 : f32 to vector<16x256xf32>
    %121 = arith.cmpf oge, %91, %120 : vector<16x256xf32>
    %cst_43 = arith.constant 0.000000e+00 : f32
    %122 = vector.broadcast %cst_43 : f32 to vector<16x256xf32>
    %123 = arith.subf %122, %119 : vector<16x256xf32>
    %124 = arith.select %121, %119, %123 : vector<16x256xi1>, vector<16x256xf32>
    %cst_44 = arith.constant 1.000000e+00 : f32
    %125 = vector.broadcast %cst_44 : f32 to vector<16x256xf32>
    %126 = arith.addf %125, %124 : vector<16x256xf32>
    %127 = arith.mulf %89, %126 : vector<16x256xf32>
    %c0_45 = arith.constant 0 : index
    %c0_46 = arith.constant 0 : index
    %128 = vector.load %arg9[%c0_45, %c0_46] : memref<4x16xf32, #tpu.memory_space<vmem>>, vector<4x16xf32>
    %cst_47 = arith.constant dense<0.000000e+00> : vector<4x256xf32>
    %129 = tpu.matmul %128, %127, %cst_47 {dimension_numbers = #tpu.dot_dimension_numbers<[1], [0], [0], [1], [0, 0, 1, 1], [], []>} : vector<4x16xf32>, vector<16x256xf32>, vector<4x256xf32> -> vector<4x256xf32>
    %c0_48 = arith.constant 0 : index
    %c0_49 = arith.constant 0 : index
    %130 = vector.load %arg10[%c0_48, %c0_49] : memref<4x1xf32, #tpu.memory_space<vmem>>, vector<4x1xf32>
    %131 = vector.broadcast %130 : vector<4x1xf32> to vector<4x256xf32>
    %132 = arith.addf %129, %131 : vector<4x256xf32>
    %133 = arith.addf %54, %132 : vector<4x256xf32>
    %c0_50 = arith.constant 0 : index
    %c0_51 = arith.constant 0 : index
    %c0_52 = arith.constant 0 : index
    %134 = vector.load %arg11[%c0_50, %c0_51, %c0_52] : memref<1x4x256xf32, #tpu.memory_space<vmem>>, vector<1x4x256xf32>
    %135 = vector.shape_cast %134 : vector<1x4x256xf32> to vector<4x256xf32>
    %136 = vector.shape_cast %133 : vector<4x256xf32> to vector<1x4x256xf32>
    tpu.vector_store %arg11[%c0_50, %c0_51, %c0_52], %136 {strides = array<i32>} : memref<1x4x256xf32, #tpu.memory_space<vmem>>, vector<1x4x256xf32>,
    return
  }
  func.func @transform_0(%arg0: i32) -> (i32, i32, i32) {
    %c0_i32 = arith.constant 0 : i32
    %c0_i32_0 = arith.constant 0 : i32
    %c0_i32_1 = arith.constant 0 : i32
    return %arg0, %c0_i32, %c0_i32_0 : i32, i32, i32
  }
  func.func @transform_1(%arg0: i32) -> (i32, i32) {
    %c0_i32 = arith.constant 0 : i32
    %c0_i32_0 = arith.constant 0 : i32
    %c0_i32_1 = arith.constant 0 : i32
    return %c0_i32, %c0_i32_0 : i32, i32
  }
  func.func @transform_2(%arg0: i32) -> (i32, i32) {
    %c0_i32 = arith.constant 0 : i32
    %c0_i32_0 = arith.constant 0 : i32
    %c0_i32_1 = arith.constant 0 : i32
    return %c0_i32, %c0_i32_0 : i32, i32
  }
  func.func @transform_3(%arg0: i32) -> (i32, i32) {
    %c0_i32 = arith.constant 0 : i32
    %c0_i32_0 = arith.constant 0 : i32
    %c0_i32_1 = arith.constant 0 : i32
    return %c0_i32, %c0_i32_0 : i32, i32
  }
  func.func @transform_4(%arg0: i32) -> (i32, i32) {
    %c0_i32 = arith.constant 0 : i32
    %c0_i32_0 = arith.constant 0 : i32
    %c0_i32_1 = arith.constant 0 : i32
    return %c0_i32, %c0_i32_0 : i32, i32
  }
  func.func @transform_5(%arg0: i32) -> (i32, i32) {
    %c0_i32 = arith.constant 0 : i32
    %c0_i32_0 = arith.constant 0 : i32
    %c0_i32_1 = arith.constant 0 : i32
    return %c0_i32, %c0_i32_0 : i32, i32
  }
  func.func @transform_6(%arg0: i32) -> (i32, i32) {
    %c0_i32 = arith.constant 0 : i32
    %c0_i32_0 = arith.constant 0 : i32
    %c0_i32_1 = arith.constant 0 : i32
    return %c0_i32, %c0_i32_0 : i32, i32
  }
  func.func @transform_7(%arg0: i32) -> (i32, i32) {
    %c0_i32 = arith.constant 0 : i32
    %c0_i32_0 = arith.constant 0 : i32
    %c0_i32_1 = arith.constant 0 : i32
    return %c0_i32, %c0_i32_0 : i32, i32
  }
  func.func @transform_8(%arg0: i32) -> (i32, i32) {
    %c0_i32 = arith.constant 0 : i32
    %c0_i32_0 = arith.constant 0 : i32
    %c0_i32_1 = arith.constant 0 : i32
    return %c0_i32, %c0_i32_0 : i32, i32
  }
  func.func @transform_9(%arg0: i32) -> (i32, i32) {
    %c0_i32 = arith.constant 0 : i32
    %c0_i32_0 = arith.constant 0 : i32
    %c0_i32_1 = arith.constant 0 : i32
    return %c0_i32, %c0_i32_0 : i32, i32
  }
  func.func @transform_10(%arg0: i32) -> (i32, i32, i32) {
    %c0_i32 = arith.constant 0 : i32
    %c0_i32_0 = arith.constant 0 : i32
    %c0_i32_1 = arith.constant 0 : i32
    return %arg0, %c0_i32, %c0_i32_0 : i32, i32, i32
  }
}

</mosaic_0001>

<bundles_post_ra>
// kernel: fm_forward.1
= control target key start
LH: loop header
LB: loop body
LE: loop exit
PB: predicated region body
PF: predicated region fallthrough
CT: control target
= control target key end

     0   :  { %s1124_s13 = smov 0   ;;  %s1263_s0 = inlined_call_operand.vmem [shape: f32[2,4,256], index: 0, kind: input, shape index: {}]   ;;  %s1264_s1 = inlined_call_operand.vmem [shape: f32[5,256], index: 1, kind: input, shape index: {}]   ;;  %s1265_s2 = inlined_call_operand.vmem [shape: f32[4,1], index: 2, kind: input, shape index: {}]   ;;  %s1266_s3 = inlined_call_operand.vmem [shape: f32[4,1], index: 3, kind: input, shape index: {}]   ;;  %s1267_s4 = inlined_call_operand.vmem [shape: f32[4,1], index: 4, kind: input, shape index: {}]   ;;  %s1268_s5 = inlined_call_operand.vmem [shape: f32[4,1], index: 5, kind: input, shape index: {}]   ;;  %s1269_s6 = inlined_call_operand.vmem [shape: f32[16,4], index: 6, kind: input, shape index: {}]   ;;  %s1270_s7 = inlined_call_operand.vmem [shape: f32[16,1], index: 7, kind: input, shape index: {}]   ;;  %s1271_s8 = inlined_call_operand.vmem [shape: f32[4,16], index: 8, kind: input, shape index: {}]   ;;  %s1272_s9 = inlined_call_operand.vmem [shape: f32[4,1], index: 9, kind: input, shape index: {}]   ;;  %s1273_s10 = inlined_call_operand.vmem [shape: f32[2,4,256], index: 10, kind: output, shape index: {}]  }
   0x1 LB: > { %s982_s14 = sadd.s32 4294967295, %s1060_s13   ;;  %p986_p0 = scmp.ge.s32.totalorder %s1060_s13, 1  ;;  %s1060_s13 = sphi %s1124_s13, %s20_s13  }
   0x2   : > { %p312_p1 = scmp.lt.s32.totalorder %s1060_s13, 3 }
   0x4   : > { %p313_p2 = pnand %p986_p0, %p312_p1 }
   0x5   : > { %p350_p3 = scmp.lt.s32.totalorder (!%p313_p2), %s982_s14, 1  ;;  %vm373_vm0 = vcmask (!%p313_p2), 1043456   ;;  %v410_v5 = vld [vmem:[%s1265_s2] sm:$0xf] (!%p313_p2)  ;;  %v1062_v6 = vmov (!%p313_p2), 0   ;;  %v418_v35 = vlaneseq (!%p313_p2)  ;;  %s1064_s25 = smov (!%p313_p2), 127  }
   0x6   : > { %316 = sbr.rel (%p313_p2) target bundleno = 1674 (0x68a), region = 60  ;;  %1031 = vset.pattern.permute.xlu1 (!%p313_p2), %v1062_v6  ;;  %1032 = vset.pattern.permute.xlu0 (!%p313_p2), %v1062_v6  ;;  %v424_v7 = vld [vmem:[%s1266_s3] sm:$0xf] (!%p313_p2)  ;;  %v1063_v33 = vmov (!%p313_p2), 839922192   ;;  %s1065_s26 = smov (!%p313_p2), 1  }
   0x7   : > { %413 = vperm.xlu1 (!%p313_p2), %1031, %v410_v5   ;;  %v416_v34 = vunpack.c.l.s4 (!%p313_p2), %v1063_v33  ;;  %v419_v37 = vshrl.u32 (!%p313_p2), %v418_v35, 7  ;;  %v446_v48 = vand.u32 (!%p313_p2), 127, %v418_v35  ;;  %v361_v51 = vld [vmem:[%s1264_s1] ss:$8 sm:$0x3] (!%p313_p2)  ;;  %s1066_s11 = smov (!%p313_p2), 16  }
   0x8   : > { %v991_v55 = vld [vmem:[%s1264_s1 + $0x1] ss:$8 sm:$0x3] (!%p313_p2)  ;;  %s1067_s12 = smov (!%p313_p2), 112   ;;  %vm643_vm5 = vcmask (!%p313_p2), 31744   ;;  %vm846_vm10 = vcmask (!%p313_p2), 130048  }
   0x9   : > { %v417_v36 = vunpack.c.0.s8 (!%p313_p2), %v416_v34  ;;  %v453_v49 = vsub.s32 (!%p313_p2), 0, %v419_v37  ;;  %v457_v50 = vsub.s32 (!%p313_p2), 1, %v419_v37  ;;  %vm447_vm1 = vcmp.lt.s32.totalorder (!%p313_p2), %v446_v48, 1 }
   0xa   : > { %vm472_vm2 = vcmp.lt.s32.totalorder (!%p313_p2), %v446_v48, 127  ;;  %vm500_vm3 = vcmp.lt.s32.totalorder (!%p313_p2), %v446_v48, 16  ;;  %vm525_vm4 = vcmp.lt.s32.totalorder (!%p313_p2), %v446_v48, 112 }
   0xb   : > { %427 = vperm.xlu1 (!%p313_p2), %1031, %v424_v7   ;;  %v1156_v39 = vsub.s32 (!%p313_p2), %v417_v36, %v419_v37  ;;  %v454_v53 = vrot.slane (!%p313_p2), %v361_v51, %v453_v49  ;;  %v458_v54 = vrot.slane (!%p313_p2), %v361_v51, %v457_v50  ;;  %v479_v62 = vrot.slane (!%p313_p2), %v991_v55, %v453_v49 }
   0xc   : > { %v483_v63 = vrot.slane (!%p313_p2), %v991_v55, %v457_v50 }
   0xd   : > { %s1275_s14 = smov (!%p350_p3, %s982_s14), 1 }
   0xe   : > { %s1002_s15 = sshll.u32 %s1275_s14, 3 }
   0xf   : > { %s354_s18 = scalar_lea.vmem %s1263_s0, %s1002_s15 }
  0x10   : > { %v1140_v0 = vld [vmem:[%s354_s18] sm:$0xff] }
  0x11   : > { %v371_v1 = vcombine.high %v1140_v0, %v1140_v0  ;;  %v374_v2 = vsel %vm373_vm0, %v1140_v0, 0.0 }
  0x13   : > { %v375_v3 = vsel %vm373_vm0, %v371_v1, 0.0 }
  0x14   : > { %v376_v4 = vadd.f32 %v375_v3, %v374_v2 }
  0x16   : > { %377 = vadd.xlane.f32.xlu0 %v376_v4 }
  0x86   : > { %v414_v38 = vpop.permute.xlu1 %413 }
  0x87   : > { %v421_v43 = vrot.slane %v414_v38, %v1156_v39 }
  0x8a   : > { %v428_v41 = vpop.permute.xlu1 %427 }
  0x8b   : > { %v435_v45 = vrot.slane %v428_v41, %v1156_v39 }
  0xa3   : > { %v378_v8 = vpop.xlane.xlu0 %377 }
  0xa4   : > { %v379_v9 = vrot.slane %v378_v8, 4 }
  0xa6   : > { %v380_v10 = vadd.f32 %v379_v9, %v378_v8 }
  0xa8   : > { %v381_v11 = vrot.slane %v380_v10, 2 }
  0xaa   : > { %v382_v12 = vadd.f32 %v381_v11, %v380_v10  ;;  %v992_v11 = vld [vmem:[%s1264_s1 + $0x2] ss:$8 sm:$0x3] }
  0xac   : > { %v383_v13 = vrot.slane %v382_v12, 1 }
  0xae   : > { %v384_v14 = vadd.f32 %v383_v13, %v382_v12  ;;  %v507_v13 = vrot.slane %v992_v11, %v453_v49 }
  0xb0   : > { %1008 = vpush %v384_v14  ;;  %v511_v14 = vrot.slane %v992_v11, %v457_v50 }
  0xe1   : > { %s1009_s23 = spop %1008 }
  0xe2   : > { %v386_v15 = vstv %s1009_s23 }
  0xe3   : > { %v387_v16 = vmul.f32 0.0009765625, %v386_v15  ;;  %v993_v15 = vld [vmem:[%s1264_s1 + $0x3] ss:$8 sm:$0x3] }
  0xe5   : > { %v388_v17 = vsub.f32 %v1140_v0, %v387_v16 }
  0xe7   : > { %v389_v18 = vmul.f32 %v388_v17, %v388_v17 }
  0xe9   : > { %v391_v19 = vcombine.high %v389_v18, %v389_v18  ;;  %v393_v20 = vsel %vm373_vm0, %v389_v18, 0.0 }
  0xeb   : > { %v394_v21 = vsel %vm373_vm0, %v391_v19, 0.0  ;;  %v994_v19 = vld [vmem:[%s1264_s1 + $0x4] ss:$8 sm:$0x3] }
  0xec   : > { %v395_v22 = vadd.f32 %v394_v21, %v393_v20 }
  0xee   : > { %396 = vadd.xlane.f32.xlu0 %v395_v22  ;;  %v532_v22 = vrot.slane %v993_v15, %v453_v49 }
 0x17b   : > { %v397_v23 = vpop.xlane.xlu0 %396 }
 0x17c   : > { %v398_v24 = vrot.slane %v397_v23, 4 }
 0x17e   : > { %v399_v25 = vadd.f32 %v398_v24, %v397_v23  ;;  %v536_v23 = vrot.slane %v993_v15, %v457_v50 }
 0x180   : > { %v400_v26 = vrot.slane %v399_v25, 2 }
 0x182   : > { %v401_v27 = vadd.f32 %v400_v26, %v399_v25  ;;  %v550_v26 = vrot.slane %v994_v19, %v453_v49 }
 0x184   : > { %v402_v28 = vrot.slane %v401_v27, 1 }
 0x186   : > { %v403_v29 = vadd.f32 %v402_v28, %v401_v27  ;;  %v554_v27 = vrot.slane %v994_v19, %v457_v50 }
 0x188   : > { %1010 = vpush %v403_v29  ;;  %v555_v34 = vcombine.low %v550_v26, %v554_v27 }
 0x1b9   : > { %s1011_s24 = spop %1010 }
 0x1ba   : > { %v405_v30 = vstv %s1011_s24 }
 0x1bb   : > { %v406_v31 = vmul.f32 0.0009765625, %v405_v30 }
 0x1bd   : > { %v407_v32 = vadd.f32 1e-05, %v406_v31 }
 0x1bf   : > { %1034 = vrsqrt.f32 %v407_v32 }
 0x1c9   : > { %v1035_v40 = vpop.eup %1034 }
 0x1ca   : > { %v409_v42 = vmul.f32 %v1035_v40, %v388_v17 }
 0x1cc   : > { %v423_v44 = vmul.f32 %v421_v43, %v409_v42 }
 0x1ce   : > { %v1160_v46 = vadd.f32 %v435_v45, %v423_v44  ;;  %v613_v45 = vld [vmem:[%s1268_s5] sm:$0xf] }
 0x1d0   : > { %468 = vrot.lane.b32.xlu1 %v1160_v46, %s1064_s25  ;;  %441 = vrot.lane.b32.xlu0 %v1160_v46, %s1065_s26  ;;  %v439_v47 = vcombine.high %v1160_v46, %v1160_v46 }
 0x1d4   : > { %443 = vrot.lane.b32.xlu1 %v439_v47, %s1065_s26 }
 0x1d8   : > { %470 = vrot.lane.b32.xlu1 %v439_v47, %s1064_s25  ;;  %v840_v47 = vld [vmem:[%s1272_s9] sm:$0xf]  ;;  %s359_s25 = scalar_lea.vmem %s1273_s10, %s1002_s15 }
 0x242   : > { %v469_v52 = vpop.permute.xlu1 %468  ;;  %v442_v56 = vpop.permute.xlu0 %441 }
 0x246   : > { %v444_v57 = vpop.permute.xlu1 %443 }
 0x247   : > { %v448_v58 = vsel %vm447_vm1, %v442_v56, %v444_v57  ;;  %v449_v59 = vsel %vm447_vm1, %v444_v57, %v442_v56 }
 0x248   : > { %v461_v60 = vmul.f32 %v454_v53, %v449_v59  ;;  %v462_v61 = vmul.f32 %v458_v54, %v448_v58 }
 0x24a   : > { %v465_v1 = vcombine.low %v461_v60, %v462_v61  ;;  %v471_v2 = vpop.permute.xlu1 %470 }
 0x24b   : > { %v473_v3 = vsel %vm472_vm2, %v469_v52, %v471_v2  ;;  %v474_v4 = vsel %vm472_vm2, %v471_v2, %v469_v52 }
 0x24c   : > { %v486_v5 = vmul.f32 %v479_v62, %v473_v3  ;;  %v487_v6 = vmul.f32 %v483_v63, %v474_v4  ;;  %v467_v7 = vadd.f32 %v465_v1, %v1160_v46  ;;  %v599_v63 = vld [vmem:[%s1267_s4] sm:$0xf]  ;;  %v1068_v1 = vmov 0.0  }
 0x24d   : > { %718 = vmatprep.mubr.f32.mxu0 %v1068_v1  ;;  %914 = vmatprep.mubr.f32.mxu1 %v1068_v1 }
 0x24e   : > { %v490_v8 = vcombine.low %v486_v5, %v487_v6 }
 0x250   : > { %v492_v9 = vadd.f32 %v490_v8, %v467_v7 }
 0x252   : > { %496 = vrot.lane.b32.xlu1 %v492_v9, %s1066_s11  ;;  %v494_v10 = vcombine.high %v492_v9, %v492_v9 }
 0x254   : > { %523 = vrot.lane.b32.xlu0 %v494_v10, %s1067_s12 }
 0x256   : > { %498 = vrot.lane.b32.xlu1 %v494_v10, %s1066_s11 }
 0x25a   : > { %521 = vrot.lane.b32.xlu1 %v492_v9, %s1067_s12 }
 0x2c4   : > { %v497_v12 = vpop.permute.xlu1 %496 }
 0x2c6   : > { %v524_v24 = vpop.permute.xlu0 %523 }
 0x2c8   : > { %v499_v16 = vpop.permute.xlu1 %498 }
 0x2c9   : > { %v501_v17 = vsel %vm500_vm3, %v497_v12, %v499_v16  ;;  %v502_v18 = vsel %vm500_vm3, %v499_v16, %v497_v12 }
 0x2ca   : > { %v514_v20 = vmul.f32 %v507_v13, %v502_v18  ;;  %v515_v21 = vmul.f32 %v511_v14, %v501_v17 }
 0x2cc   : > { %v518_v25 = vcombine.low %v514_v20, %v515_v21  ;;  %v522_v28 = vpop.permute.xlu1 %521  ;;  %v627_v21 = vld [vmem:[%s1269_s6] sm:$0xff] }
 0x2cd   : > { %v526_v29 = vsel %vm525_vm4, %v522_v28, %v524_v24  ;;  %v527_v30 = vsel %vm525_vm4, %v524_v24, %v522_v28 }
 0x2ce   : > { %v539_v31 = vmul.f32 %v532_v22, %v526_v29  ;;  %v540_v32 = vmul.f32 %v536_v23, %v527_v30  ;;  %v520_v33 = vadd.f32 %v518_v25, %v492_v9  ;;  %v628_v22 = vld [vmem:[%s1269_s6 + $0x8] sm:$0xff] }
 0x2d0   : > { %v543_v35 = vcombine.low %v539_v31, %v540_v32 }
 0x2d2   : > { %v545_v36 = vadd.f32 %v543_v35, %v520_v33 }
 0x2d4   : > { %v557_v37 = vmul.f32 %v555_v34, %v545_v36 }
 0x2d6   : > { %v558_v38 = vsub.f32 %v557_v37, %v1160_v46  ;;  %v630_v46 = vld [vmem:[%s1270_s7 + $0x8] sm:$0xff] }
 0x2d8   : > { %v1184_v40 = vadd.f32 %v558_v38, %v1140_v0  ;;  %v629_v0 = vld [vmem:[%s1270_s7] sm:$0xff] }
 0x2da   : > { %v561_v41 = vcombine.high %v1184_v40, %v1184_v40  ;;  %v563_v42 = vsel %vm373_vm0, %v1184_v40, 0.0 }
 0x2dc   : > { %v564_v43 = vsel %vm373_vm0, %v561_v41, 0.0 }
 0x2dd   : > { %v565_v44 = vadd.f32 %v564_v43, %v563_v42 }
 0x2df   : > { %566 = vadd.xlane.f32.xlu1 %v565_v44 }
 0x2f0   : > { %616 = vperm.xlu1 %1031, %v613_v45  }
 0x2f4   : > { %633 = vperm.xlu1 %1031, %v629_v0  }
 0x2f8   : > { %638 = vperm.xlu1 %1031, %v630_v46  }
 0x2fc   : > { %843 = vperm.xlu1 %1031, %v840_v47  }
 0x36c   : > { %v567_v48 = vpop.xlane.xlu1 %566 }
 0x36d   : > { %v568_v49 = vrot.slane %v567_v48, 4 }
 0x36f   : > { %v569_v50 = vadd.f32 %v568_v49, %v567_v48 }
 0x370   : > { %v617_v15 = vpop.permute.xlu1 %616 }
 0x371   : > { %v570_v51 = vrot.slane %v569_v50, 2  ;;  %v624_v17 = vrot.slane %v617_v15, %v1156_v39 }
 0x373   : > { %v571_v52 = vadd.f32 %v570_v51, %v569_v50 }
 0x375   : > { %v572_v53 = vrot.slane %v571_v52, 1 }
 0x377   : > { %v573_v54 = vadd.f32 %v572_v53, %v571_v52 }
 0x379   : > { %1012 = vpush %v573_v54 }
 0x3aa   : > { %s1013_s30 = spop %1012 }
 0x3ab   : > { %v575_v55 = vstv %s1013_s30 }
 0x3ac   : > { %v576_v56 = vmul.f32 0.0009765625, %v575_v55 }
 0x3ae   : > { %v577_v57 = vsub.f32 %v1184_v40, %v576_v56 }
 0x3b0   : > { %v578_v58 = vmul.f32 %v577_v57, %v577_v57 }
 0x3b2   : > { %v580_v59 = vcombine.high %v578_v58, %v578_v58  ;;  %v582_v60 = vsel %vm373_vm0, %v578_v58, 0.0 }
 0x3b4   : > { %v583_v61 = vsel %vm373_vm0, %v580_v59, 0.0 }
 0x3b5   : > { %v584_v62 = vadd.f32 %v583_v61, %v582_v60 }
 0x3b7   : > { %585 = vadd.xlane.f32.xlu0 %v584_v62 }
 0x3cd   : > { %602 = vperm.xlu0 %1032, %v599_v63  }
 0x444   : > { %v586_v2 = vpop.xlane.xlu0 %585 }
 0x445   : > { %v587_v3 = vrot.slane %v586_v2, 4 }
 0x447   : > { %v588_v4 = vadd.f32 %v587_v3, %v586_v2 }
 0x449   : > { %v589_v5 = vrot.slane %v588_v4, 2 }
 0x44b   : > { %v590_v6 = vadd.f32 %v589_v5, %v588_v4 }
 0x44c   : > { %v603_v12 = vpop.permute.xlu0 %602 }
 0x44d   : > { %v591_v7 = vrot.slane %v590_v6, 1  ;;  %v610_v13 = vrot.slane %v603_v12, %v1156_v39  ;;  %v634_v39 = vpop.permute.xlu1 %633 }
 0x44f   : > { %v592_v8 = vadd.f32 %v591_v7, %v590_v6 }
 0x451   : > { %1014 = vpush %v592_v8  ;;  %v639_v28 = vpop.permute.xlu1 %638 }
 0x482   : > { %s1015_s16 = spop %1014 }
 0x483   : > { %v594_v9 = vstv %s1015_s16 }
 0x484   : > { %v595_v10 = vmul.f32 0.0009765625, %v594_v9 }
 0x486   : > { %v596_v11 = vadd.f32 1e-05, %v595_v10 }
 0x488   : > { %1036 = vrsqrt.f32 %v596_v11 }
 0x492   : > { %v1037_v14 = vpop.eup %1036 }
 0x493   : > { %v598_v16 = vmul.f32 %v1037_v14, %v577_v57 }
 0x495   : > { %v612_v18 = vmul.f32 %v610_v13, %v598_v16 }
 0x497   : > { %v626_v19 = vadd.f32 %v624_v17, %v612_v18 }
 0x499   : > { %v642_v20 = vcombine.high %v626_v19, %v626_v19 }
 0x49b   : > { %995 = vmatprep.subr.msk.mxu0 %vm373_vm0, %v642_v20 }
 0x49c   : > { %996 = vmatpush1.msk.msra.mxu0 %vm373_vm0, %v626_v19 }
 0x49d   : > { %997 = vmatmul.mubr.msk.f32.vlgmr.msra.gmra.mrb[0].mxu0 %vm643_vm5, %v627_v21 }
 0x49e   : > { %724 = vmatprep.mubr.f32.mxu0 %v1068_v1 }
 0x4a1   : > { %998 = vmatmul.mubr.msk.f32.gmra.mrb[2].mxu0 %vm643_vm5, %v628_v22 }
 0x570   : > { %v720_v23 = vpop.f32.mrb[0].mxu0 }
 0x571   : > { %v1219_v24 = vadd.f32 %v720_v23, %v634_v39  ;;  %v722_v25 = vpop.f32.mrb[1].mxu0 }
 0x572   : > { %v1221_v26 = vadd.f32 %v722_v25, %v634_v39 }
 0x573   : > { %v1224_v27 = vmul.f32 0.70710677, %v1219_v24 }
 0x574   : > { %v1227_v29 = vmul.f32 0.70710677, %v1221_v26  ;;  %v726_v30 = vpop.f32.mrb[2].mxu0 }
 0x575   : > { %v739_v31 = vand.u32 2147483647, %v1224_v27  ;;  %v1230_v32 = vadd.f32 %v726_v30, %v639_v28  ;;  %v728_v33 = vpop.f32.mrb[3].mxu0  ;;  %vm819_vm6 = vcmp.ge.f32.partialorder %v1224_v27, 0.0 }
 0x576   : > { %v740_v34 = vand.u32 2147483647, %v1227_v29  ;;  %v1233_v35 = vadd.f32 %v728_v33, %v639_v28  ;;  %vm820_vm7 = vcmp.ge.f32.partialorder %v1227_v29, 0.0  ;;  %v732_v29 = vmul.f32 0.5, %v1221_v26 }
 0x577   : > { %v743_v36 = vmul.f32 0.3275911, %v739_v31  ;;  %v1236_v37 = vmul.f32 0.70710677, %v1230_v32  ;;  %v795_v49 = vsub.f32 0.0, %v739_v31  ;;  %v733_v27 = vmul.f32 0.5, %v1230_v32  ;;  %v844_v32 = vpop.permute.xlu1 %843 }
 0x578   : > { %v744_v38 = vmul.f32 0.3275911, %v740_v34  ;;  %v1239_v41 = vmul.f32 0.70710677, %v1233_v35  ;;  %v796_v50 = vsub.f32 0.0, %v740_v34 }
 0x579   : > { %v747_v42 = vadd.f32 1.0, %v743_v36  ;;  %v741_v43 = vand.u32 2147483647, %v1236_v37  ;;  %v799_v52 = vmul.f32 %v795_v49, %v739_v31  ;;  %vm821_vm8 = vcmp.ge.f32.partialorder %v1236_v37, 0.0 }
 0x57a   : > { %v748_v44 = vadd.f32 1.0, %v744_v38  ;;  %v742_v45 = vand.u32 2147483647, %v1239_v41  ;;  %v800_v55 = vmul.f32 %v796_v50, %v740_v34  ;;  %vm822_vm9 = vcmp.ge.f32.partialorder %v1239_v41, 0.0 }
 0x57b   : > { %1038 = vrcp.f32 %v747_v42  ;;  %v745_v0 = vmul.f32 0.3275911, %v741_v43  ;;  %v797_v53 = vsub.f32 0.0, %v741_v43  ;;  %v803_v61 = vmul.f32 1.442695, %v799_v52 }
 0x57c   : > { %1040 = vrcp.f32 %v748_v44  ;;  %v746_v46 = vmul.f32 0.3275911, %v742_v45  ;;  %v798_v56 = vsub.f32 0.0, %v742_v45  ;;  %v805_v2 = vmul.f32 1.442695, %v800_v55 }
 0x57d   : > { %v749_v47 = vadd.f32 1.0, %v745_v0  ;;  %v801_v62 = vmul.f32 %v797_v53, %v741_v43 }
 0x57e   : > { %v750_v48 = vadd.f32 1.0, %v746_v46  ;;  %v802_v3 = vmul.f32 %v798_v56, %v742_v45 }
 0x57f   : > { %1042 = vrcp.f32 %v749_v47  ;;  %v807_v10 = vmul.f32 1.442695, %v801_v62 }
 0x580   : > { %1044 = vrcp.f32 %v750_v48  ;;  %v809_v13 = vmul.f32 1.442695, %v802_v3 }
 0x581   : > { %1046 = vpow2.f32 %v803_v61 }
 0x582   : > { %1048 = vpow2.f32 %v805_v2 }
 0x583   : > { %1050 = vpow2.f32 %v807_v10 }
 0x584   : > { %1052 = vpow2.f32 %v809_v13 }
 0x585   : > { %v1039_v51 = vpop.eup %1038 }
 0x586   : > { %v1041_v54 = vpop.eup %1040  ;;  %v759_v57 = vmul.f32 1.0614054, %v1039_v51 }
 0x587   : > { %v760_v58 = vmul.f32 1.0614054, %v1041_v54 }
 0x588   : > { %v763_v59 = vadd.f32 -1.4531521, %v759_v57 }
 0x589   : > { %v1043_v60 = vpop.eup %1042  ;;  %v764_v63 = vadd.f32 -1.4531521, %v760_v58 }
 0x58a   : > { %v1045_v1 = vpop.eup %1044  ;;  %v761_v4 = vmul.f32 1.0614054, %v1043_v60  ;;  %v767_v5 = vmul.f32 %v1039_v51, %v763_v59 }
 0x58b   : > { %v762_v6 = vmul.f32 1.0614054, %v1045_v1  ;;  %v768_v7 = vmul.f32 %v1041_v54, %v764_v63  ;;  %v1047_v38 = vpop.eup %1046 }
 0x58c   : > { %v765_v8 = vadd.f32 -1.4531521, %v761_v4  ;;  %v771_v9 = vadd.f32 1.4214138, %v767_v5  ;;  %v1049_v44 = vpop.eup %1048  ;;  %v731_v4 = vmul.f32 0.5, %v1219_v24 }
 0x58d   : > { %v766_v11 = vadd.f32 -1.4531521, %v762_v6  ;;  %v772_v12 = vadd.f32 1.4214138, %v768_v7  ;;  %v1051_v50 = vpop.eup %1050  ;;  %v734_v7 = vmul.f32 0.5, %v1233_v35 }
 0x58e   : > { %v769_v14 = vmul.f32 %v1043_v60, %v765_v8  ;;  %v775_v15 = vmul.f32 %v1039_v51, %v771_v9  ;;  %v1053_v55 = vpop.eup %1052  ;;  %v839_v24 = vld [vmem:[%s1271_s8] sm:$0xf] }
 0x58f   : > { %v770_v16 = vmul.f32 %v1045_v1, %v766_v11  ;;  %v776_v17 = vmul.f32 %v1041_v54, %v772_v12 }
 0x590   : > { %v773_v18 = vadd.f32 1.4214138, %v769_v14  ;;  %v779_v19 = vadd.f32 -0.28449672, %v775_v15 }
 0x591   : > { %v774_v20 = vadd.f32 1.4214138, %v770_v16  ;;  %v780_v21 = vadd.f32 -0.28449672, %v776_v17 }
 0x592   : > { %v777_v22 = vmul.f32 %v1043_v60, %v773_v18  ;;  %v783_v39 = vmul.f32 %v1039_v51, %v779_v19 }
 0x593   : > { %v778_v23 = vmul.f32 %v1045_v1, %v774_v20  ;;  %v784_v25 = vmul.f32 %v1041_v54, %v780_v21 }
 0x594   : > { %v781_v28 = vadd.f32 -0.28449672, %v777_v22  ;;  %v787_v30 = vadd.f32 0.2548296, %v783_v39 }
 0x595   : > { %v782_v31 = vadd.f32 -0.28449672, %v778_v23  ;;  %v788_v33 = vadd.f32 0.2548296, %v784_v25 }
 0x596   : > { %v785_v34 = vmul.f32 %v1043_v60, %v781_v28  ;;  %v791_v36 = vmul.f32 %v1039_v51, %v787_v30 }
 0x597   : > { %v786_v42 = vmul.f32 %v1045_v1, %v782_v31  ;;  %v792_v43 = vmul.f32 %v1041_v54, %v788_v33 }
 0x598   : > { %v789_v45 = vadd.f32 0.2548296, %v785_v34  ;;  %v811_v0 = vmul.f32 %v1047_v38, %v791_v36 }
 0x599   : > { %v790_v46 = vadd.f32 0.2548296, %v786_v42  ;;  %v812_v47 = vmul.f32 %v1049_v44, %v792_v43 }
 0x59a   : > { %v793_v48 = vmul.f32 %v1043_v60, %v789_v45  ;;  %v815_v49 = vsub.f32 1.0, %v811_v0 }
 0x59b   : > { %v794_v52 = vmul.f32 %v1045_v1, %v790_v46  ;;  %v816_v53 = vsub.f32 1.0, %v812_v47 }
 0x59c   : > { %v813_v56 = vmul.f32 %v1051_v50, %v793_v48  ;;  %v823_v57 = vsub.f32 0.0, %v815_v49 }
 0x59d   : > { %v814_v58 = vmul.f32 %v1053_v55, %v794_v52  ;;  %v824_v51 = vsub.f32 0.0, %v816_v53 }
 0x59e   : > { %v817_v54 = vsub.f32 1.0, %v813_v56  ;;  %v827_v59 = vsel %vm819_vm6, %v815_v49, %v823_v57 }
 0x59f   : > { %v818_v61 = vsub.f32 1.0, %v814_v58  ;;  %v828_v62 = vsel %vm820_vm7, %v816_v53, %v824_v51  ;;  %v831_v2 = vadd.f32 1.0, %v827_v59 }
 0x5a0   : > { %v825_v63 = vsub.f32 0.0, %v817_v54  ;;  %v832_v1 = vadd.f32 1.0, %v828_v62 }
 0x5a1   : > { %v826_v60 = vsub.f32 0.0, %v818_v61  ;;  %v835_v9 = vmul.f32 %v831_v2, %v731_v4 }
 0x5a2   : > { %v829_v3 = vsel %vm821_vm8, %v817_v54, %v825_v63  ;;  %v836_v37 = vmul.f32 %v832_v1, %v732_v29 }
 0x5a3   : > { %v830_v5 = vsel %vm822_vm9, %v818_v61, %v826_v60  ;;  %v833_v6 = vadd.f32 1.0, %v829_v3 }
 0x5a4   : > { %v834_v8 = vadd.f32 1.0, %v830_v5 }
 0x5a5   : > { %v837_v10 = vmul.f32 %v833_v6, %v733_v27 }
 0x5a6   : > { %v838_v11 = vmul.f32 %v834_v8, %v734_v7 }
 0x5a7   : > { %v1006_v12 = vpack.c.bf16 %v837_v10, %v835_v9 }
 0x5a8   : > { %v1004_v41 = vpack.c.bf16 %v838_v11, %v836_v37 }
 0x5aa   : > { %1005 = vmatprep.subr.bf16.mxu1 %v1004_v41 }
 0x5ab   : > { %1007 = vmatpush1.bf16.msra.mxu1 %v1006_v12 }
 0x5ae   : > { %999 = vmatmul.mubr.msk.f32.vlgmr.msra.gmra.mrb[0].mxu1 %vm846_vm10, %v839_v24 }
 0x681   : > { %v916_v26 = vpop.f32.mrb[0].mxu1 }
 0x682   : > { %v917_v13 = vadd.f32 %v916_v26, %v844_v32  ;;  %v918_v35 = vpop.f32.mrb[1].mxu1 }
 0x683   : > { %v919_v14 = vadd.f32 %v918_v35, %v844_v32 }
 0x685   : > { %v923_v15 = vcombine.low %v917_v13, %v919_v14 }
 0x687   : > { %v925_v16 = vadd.f32 %v923_v15, %v1184_v40 }
 0x689   : > { %926 = vst [vmem:[%s359_s25] sm:$0xff] %v925_v16 }
 0x68a PF: > { %s20_s13 = sadd.s32 1, %s1060_s13  }
 0x68b   : > { %p17_p4 = scmp.ge.s32.totalorder %s20_s13, 4  }
 0x68d   :  { %19 = sbr.rel (!%p17_p4) target bundleno = 1 (0x1), region = 94 }

</bundles_post_ra>
